<compile_context>
chip_gen: v7x
topology: tpu7x:2x2x1
jax: 0.10.0
libtpu: 0.0.40
codegen_flags: <defaults>
</compile_context>

<pallas_src>
import jax
import jax.numpy as jnp
from jax import lax
from jax.experimental import pallas as pl
from jax.experimental.pallas import tpu as pltpu


def _round_up(x, m):
    return ((x + m - 1) // m) * m


def _device_budgets():
    """Per-generation VMEM working budget / scoped limit and TC count hint."""
    vmem_cap = 128 << 20
    try:
        vmem_cap = int(pltpu.get_tpu_info().vmem_capacity_bytes)
    except Exception:
        pass
    kind = ""
    try:
        kind = jax.devices()[0].device_kind.lower()
    except Exception:
        pass
    # v7x has 2 TensorCores per chip (and only 64 MiB VMEM per TC).
    two_tc = ("v7" in kind) or ("7x" in kind) or (vmem_cap <= (80 << 20))
    vmem_limit = min((vmem_cap * 3) // 4, 96 << 20)   # 96 MiB on 128-MiB parts, 48 MiB on v7x
    budget = (vmem_limit * 2) // 5                    # ~38 MiB v5e/v6e, ~19 MiB v7x
    return budget, vmem_limit, two_tc


def _choose_chunk_block(C, Pp, Lp, Rp, Dp, in_itemsize, out_itemsize,
                        budget, two_tc):
    """Largest chunk-block whose per-step footprint (double-buffered I/O plus
    in-kernel temporaries) fits the VMEM budget.  Uses a cdiv grid, so no
    divisor search; the megacore >=2-step clamp only applies on 2-TC parts."""
    in_bytes = (2 * Pp + Lp + Rp) * Dp * in_itemsize
    out_bytes = (Pp + Pp * Lp + Pp * Rp) * out_itemsize
    # Temporaries: 2 homogeneous copies of the positive tiles, f32 einsum
    # accumulators for both neg-score slabs, f32 biases / pos scores.
    tmp_bytes = (2 * Pp * Dp * in_itemsize
                 + 4 * (Pp * Lp + Pp * Rp)
                 + 4 * 4 * Pp)
    per_chunk = 2 * (in_bytes + out_bytes) + tmp_bytes
    cb = max(1, int(budget // max(per_chunk, 1)))
    cb = min(cb, C)
    if two_tc and C >= 2:
        cb = min(cb, (C + 1) // 2)   # guarantee >= 2 grid steps for 2 TCs
    return cb


def _make_biased_dot_kernel(use_bf16_matmul: bool):
    def kernel(lp_ref, rp_ref, ln_ref, rn_ref, pos_ref, lns_ref, rns_ref):
        lp = lp_ref[...]            # (Cb, Pp, Dp)  lane 0 = lhs_pos bias
        rp = rp_ref[...]            # (Cb, Pp, Dp)  lane 0 = rhs_pos bias
        ln = ln_ref[...]            # (Cb, Lp, Dp)  UNMASKED, lane 0 = lhs_neg bias
        rn = rn_ref[...]            # (Cb, Rp, Dp)  UNMASKED, lane 0 = rhs_neg bias

        # One hoisted lane==0 mask, reused everywhere (no per-tensor iota).
        lane0 = lax.broadcasted_iota(jnp.int32, (1, 1, lp.shape[-1]), 2) == 0

        # Row (positive-side) biases, needed standalone for the broadcast adds.
        lp_b = jnp.sum(jnp.where(lane0, lp, 0.0), axis=-1).astype(jnp.float32)
        rp_b = jnp.sum(jnp.where(lane0, rp, 0.0), axis=-1).astype(jnp.float32)

        # Homogeneous-coordinate operands: lane 0 -> 1.0 so the matmul against
        # the UNMASKED negatives folds the column (negative-side) bias into the
        # MXU pass:  <hom(x), y> = sum(x_emb * y_emb) + y_bias.
        lp_h = jnp.where(lane0, 1.0, lp).astype(lp.dtype)
        rp_h = jnp.where(lane0, 1.0, rp).astype(rp.dtype)

        # <L+, R+>: hom(L+) against unmasked R+ gives emb-dot + R+ bias; add
        # the L+ bias.  Emitted lane-dense as (Cb, 1, Pp).
        pos = jnp.sum((lp_h * rp).astype(jnp.float32), axis=-1) + lp_b
        pos_ref[...] = pos[:, None, :].astype(pos_ref.dtype)

        mm_dtype = jnp.bfloat16 if use_bf16_matmul else lp.dtype

        # R+ (x) L-: MXU yields emb-dot + lhs_neg column bias; add rhs_pos row bias.
        lns = jnp.einsum('bpd,bld->bpl',
                         rp_h.astype(mm_dtype), ln.astype(mm_dtype),
                         preferred_element_type=jnp.float32)       # (Cb, Pp, Lp)
        lns_ref[...] = (lns + rp_b[:, :, None]).astype(lns_ref.dtype)

        # L+ (x) R-: MXU yields emb-dot + rhs_neg column bias; add lhs_pos row bias.
        rns = jnp.einsum('bpd,brd->bpr',
                         lp_h.astype(mm_dtype), rn.astype(mm_dtype),
                         preferred_element_type=jnp.float32)       # (Cb, Pp, Rp)
        rns_ref[...] = (rns + lp_b[:, :, None]).astype(rns_ref.dtype)

    return kernel


def biased_dot_prepare(embs):
    # DotComparator.prepare is the identity, so BiasedComparator.prepare is too
    # (concat of bias column with identity-prepared rest == input unchanged).
    return embs


def biased_dot_forward(lhs_pos, rhs_pos, lhs_neg, rhs_neg, *,
                       use_bf16_matmul=True, out_dtype=None):
    """BiasedComparator(DotComparator()).forward.

    lhs_pos, rhs_pos: (C, P, D);  lhs_neg: (C, L, D);  rhs_neg: (C, R, D)
    returns pos_scores (C, P), lhs_neg_scores (C, P, L), rhs_neg_scores (C, P, R)

    use_bf16_matmul: bf16 MXU operands with f32 accumulation (production
      default).  Pass False for exact-f32 results matching the reference.
    out_dtype: optionally emit the scores in a narrower dtype (e.g. bf16) to
      halve HBM writeback in the memory-bound regime.
    """
    C, P, D = lhs_pos.shape
    assert rhs_pos.shape == (C, P, D)
    assert lhs_neg.shape[0] == C and lhs_neg.shape[2] == D
    assert rhs_neg.shape[0] == C and rhs_neg.shape[2] == D
    L = lhs_neg.shape[1]
    R = rhs_neg.shape[1]
    in_dtype = lhs_pos.dtype
    out_dtype = jnp.dtype(in_dtype) if out_dtype is None else jnp.dtype(out_dtype)

    # Pad so all stores are lane-dense (L/R/D multiples of 128) and sublane
    # aligned (P multiple of 8).  Padding is zeros, so it contributes nothing
    # to the dots/biases and is sliced off below.
    Pp = _round_up(P, 8)
    Lp = _round_up(L, 128)
    Rp = _round_up(R, 128)
    Dp = _round_up(D, 128)

    def pad3(x, n_to, d_to):
        n, d = x.shape[1], x.shape[2]
        if n == n_to and d == d_to:
            return x
        return jnp.pad(x, ((0, 0), (0, n_to - n), (0, d_to - d)))

    lp = pad3(lhs_pos, Pp, Dp)
    rp = pad3(rhs_pos, Pp, Dp)
    ln = pad3(lhs_neg, Lp, Dp)
    rn = pad3(rhs_neg, Rp, Dp)

    budget, vmem_limit, two_tc = _device_budgets()
    cb = _choose_chunk_block(C, Pp, Lp, Rp, Dp,
                             jnp.dtype(in_dtype).itemsize,
                             out_dtype.itemsize,
                             budget, two_tc)
    grid = (pl.cdiv(C, cb),)   # ragged last block handled by Pallas masking

    blk = lambda n, d: pl.BlockSpec((cb, n, d), lambda c: (c, 0, 0))

    pos3, lns, rns = pl.pallas_call(
        _make_biased_dot_kernel(use_bf16_matmul),
        grid=grid,
        in_specs=[blk(Pp, Dp), blk(Pp, Dp), blk(Lp, Dp), blk(Rp, Dp)],
        out_specs=[
            pl.BlockSpec((cb, 1, Pp), lambda c: (c, 0, 0)),  # pos, P on lanes
            blk(Pp, Lp),
            blk(Pp, Rp),
        ],
        out_shape=[
            jax.ShapeDtypeStruct((C, 1, Pp), out_dtype),
            jax.ShapeDtypeStruct((C, Pp, Lp), out_dtype),
            jax.ShapeDtypeStruct((C, Pp, Rp), out_dtype),
        ],
        compiler_params=pltpu.CompilerParams(
            dimension_semantics=("parallel",),
            vmem_limit_bytes=vmem_limit,
        ),
    )(lp, rp, ln, rn)

    pos = pos3.reshape(C, Pp)[:, :P]
    return pos, lns[:, :P, :L], rns[:, :P, :R]


def _reference(lhs_pos, rhs_pos, lhs_neg, rhs_neg):
    # Pure-JAX reference mirroring the PyTorch forward exactly.
    pos = (jnp.sum(lhs_pos[..., 1:] * rhs_pos[..., 1:], axis=-1)
           + lhs_pos[..., 0] + rhs_pos[..., 0])
    lns = (jnp.einsum('cpd,cld->cpl', rhs_pos[..., 1:], lhs_neg[..., 1:])
           + rhs_pos[..., 0][..., None] + lhs_neg[..., 0][:, None, :])
    rns = (jnp.einsum('cpd,crd->cpr', lhs_pos[..., 1:], rhs_neg[..., 1:])
           + lhs_pos[..., 0][..., None] + rhs_neg[..., 0][:, None, :])
    return pos, lns, rns


if __name__ == "__main__":
    key = jax.random.PRNGKey(0)
    kl, kr, kln, krn = jax.random.split(key, 4)

    C, P, L, R, D = 2, 8, 16, 16, 33   # D = 1 bias + 32 embedding dims

    lhs_pos = jax.random.normal(kl, (C, P, D), dtype=jnp.float32)
    rhs_pos = jax.random.normal(kr, (C, P, D), dtype=jnp.float32)
    lhs_neg = jax.random.normal(kln, (C, L, D), dtype=jnp.float32)
    rhs_neg = jax.random.normal(krn, (C, R, D), dtype=jnp.float32)

    # prepare() is identity for the dot base comparator.
    lhs_pos = biased_dot_prepare(lhs_pos)
    rhs_pos = biased_dot_prepare(rhs_pos)
    lhs_neg = biased_dot_prepare(lhs_neg)
    rhs_neg = biased_dot_prepare(rhs_neg)

    pos_ref, lns_ref, rns_ref = _reference(lhs_pos, rhs_pos, lhs_neg, rhs_neg)

    # Exact-f32 path (matches the PyTorch/f32 reference within tight tolerance).
    pos, lns, rns = biased_dot_forward(lhs_pos, rhs_pos, lhs_neg, rhs_neg,
                                       use_bf16_matmul=False)
    jax.block_until_ready((pos, lns, rns))
    assert pos.shape == (C, P) and lns.shape == (C, P, L) and rns.shape == (C, P, R)
    assert jnp.allclose(pos, pos_ref, atol=1e-5, rtol=1e-5)
    assert jnp.allclose(lns, lns_ref, atol=1e-5, rtol=1e-5)
    assert jnp.allclose(rns, rns_ref, atol=1e-5, rtol=1e-5)

    # Production default path (bf16 MXU operands, f32 accumulation): looser
    # tolerance from the bf16 rounding of the operands.
    pos_b, lns_b, rns_b = biased_dot_forward(lhs_pos, rhs_pos, lhs_neg, rhs_neg)
    jax.block_until_ready((pos_b, lns_b, rns_b))
    assert jnp.allclose(pos_b, pos_ref, atol=2e-1, rtol=5e-2)
    assert jnp.allclose(lns_b, lns_ref, atol=2e-1, rtol=5e-2)
    assert jnp.allclose(rns_b, rns_ref, atol=2e-1, rtol=5e-2)

    print("KERNEL_OK")
</pallas_src>

<mosaic_0001>
module attributes {stable_mosaic.version = 11 : i64} {
  func.func @kernel(%arg0: i32, %arg1: memref<2x8x128xf32, #tpu.memory_space<vmem>>, %arg2: memref<2x8x128xf32, #tpu.memory_space<vmem>>, %arg3: memref<2x128x128xf32, #tpu.memory_space<vmem>>, %arg4: memref<2x128x128xf32, #tpu.memory_space<vmem>>, %arg5: memref<2x1x8xf32, #tpu.memory_space<vmem>>, %arg6: memref<2x8x128xf32, #tpu.memory_space<vmem>>, %arg7: memref<2x8x128xf32, #tpu.memory_space<vmem>>) attributes {dimension_semantics = [#tpu.dimension_semantics<parallel>], iteration_bounds = array<i64: 1>, scalar_prefetch = 0 : i64, scratch_operands = 0 : i64, tpu.core_type = #tpu.core_type<tc>, window_params = [{transform_indices = @transform_0, window_bounds = array<i64: 2, 8, 128>}, {transform_indices = @transform_1, window_bounds = array<i64: 2, 8, 128>}, {transform_indices = @transform_2, window_bounds = array<i64: 2, 128, 128>}, {transform_indices = @transform_3, window_bounds = array<i64: 2, 128, 128>}, {transform_indices = @transform_4, window_bounds = array<i64: 2, 1, 8>}, {transform_indices = @transform_5, window_bounds = array<i64: 2, 8, 128>}, {transform_indices = @transform_6, window_bounds = array<i64: 2, 8, 128>}]} {
    %c0 = arith.constant 0 : index
    %c0_0 = arith.constant 0 : index
    %c0_1 = arith.constant 0 : index
    %0 = vector.load %arg1[%c0, %c0_0, %c0_1] : memref<2x8x128xf32, #tpu.memory_space<vmem>>, vector<2x8x128xf32>
    %c0_2 = arith.constant 0 : index
    %c0_3 = arith.constant 0 : index
    %c0_4 = arith.constant 0 : index
    %1 = vector.load %arg2[%c0_2, %c0_3, %c0_4] : memref<2x8x128xf32, #tpu.memory_space<vmem>>, vector<2x8x128xf32>
    %c0_5 = arith.constant 0 : index
    %c0_6 = arith.constant 0 : index
    %c0_7 = arith.constant 0 : index
    %2 = vector.load %arg3[%c0_5, %c0_6, %c0_7] : memref<2x128x128xf32, #tpu.memory_space<vmem>>, vector<2x128x128xf32>
    %c0_8 = arith.constant 0 : index
    %c0_9 = arith.constant 0 : index
    %c0_10 = arith.constant 0 : index
    %3 = vector.load %arg4[%c0_8, %c0_9, %c0_10] : memref<2x128x128xf32, #tpu.memory_space<vmem>>, vector<2x128x128xf32>
    %4 = tpu.iota {dimensions = array<i32: 2>} : vector<1x1x128xi32>
    %c0_i32 = arith.constant 0 : i32
    %5 = vector.broadcast %c0_i32 : i32 to vector<1x1x128xi32>
    %6 = arith.cmpi eq, %4, %5 : vector<1x1x128xi32>
    %cst = arith.constant 0.000000e+00 : f32
    %7 = vector.shape_cast %6 : vector<1x1x128xi1> to vector<1x1x128xi1>
    %8 = vector.broadcast %7 : vector<1x1x128xi1> to vector<2x8x128xi1>
    %9 = vector.broadcast %cst : f32 to vector<2x8x128xf32>
    %10 = arith.select %8, %0, %9 : vector<2x8x128xi1>, vector<2x8x128xf32>
    %cst_11 = arith.constant dense<0.000000e+00> : vector<2x8xf32>
    %11 = vector.multi_reduction <add>, %10, %cst_11 [2] : vector<2x8x128xf32> to vector<2x8xf32>
    %cst_12 = arith.constant 0.000000e+00 : f32
    %12 = vector.shape_cast %6 : vector<1x1x128xi1> to vector<1x1x128xi1>
    %13 = vector.broadcast %12 : vector<1x1x128xi1> to vector<2x8x128xi1>
    %14 = vector.broadcast %cst_12 : f32 to vector<2x8x128xf32>
    %15 = arith.select %13, %1, %14 : vector<2x8x128xi1>, vector<2x8x128xf32>
    %cst_13 = arith.constant dense<0.000000e+00> : vector<2x8xf32>
    %16 = vector.multi_reduction <add>, %15, %cst_13 [2] : vector<2x8x128xf32> to vector<2x8xf32>
    %cst_14 = arith.constant 1.000000e+00 : f32
    %17 = vector.shape_cast %6 : vector<1x1x128xi1> to vector<1x1x128xi1>
    %18 = vector.broadcast %17 : vector<1x1x128xi1> to vector<2x8x128xi1>
    %19 = vector.broadcast %cst_14 : f32 to vector<2x8x128xf32>
    %20 = arith.select %18, %19, %0 : vector<2x8x128xi1>, vector<2x8x128xf32>
    %cst_15 = arith.constant 1.000000e+00 : f32
    %21 = vector.shape_cast %6 : vector<1x1x128xi1> to vector<1x1x128xi1>
    %22 = vector.broadcast %21 : vector<1x1x128xi1> to vector<2x8x128xi1>
    %23 = vector.broadcast %cst_15 : f32 to vector<2x8x128xf32>
    %24 = arith.select %22, %23, %1 : vector<2x8x128xi1>, vector<2x8x128xf32>
    %25 = arith.mulf %20, %1 : vector<2x8x128xf32>
    %cst_16 = arith.constant dense<0.000000e+00> : vector<2x8xf32>
    %26 = vector.multi_reduction <add>, %25, %cst_16 [2] : vector<2x8x128xf32> to vector<2x8xf32>
    %27 = arith.addf %26, %11 : vector<2x8xf32>
    %28 = vector.shape_cast %27 : vector<2x8xf32> to vector<2x1x8xf32>
    %c0_17 = arith.constant 0 : index
    %c0_18 = arith.constant 0 : index
    %c0_19 = arith.constant 0 : index
    %29 = vector.load %arg5[%c0_17, %c0_18, %c0_19] : memref<2x1x8xf32, #tpu.memory_space<vmem>>, vector<2x1x8xf32>
    tpu.vector_store %arg5[%c0_17, %c0_18, %c0_19], %28 {strides = array<i32>} : memref<2x1x8xf32, #tpu.memory_space<vmem>>, vector<2x1x8xf32>,
    "tpu.trace_start"() <{level = 10 : i32, message = "bpd,bld->bpl"}> : () -> ()
    %cst_20 = arith.constant dense<0.000000e+00> : vector<2x8x128xf32>
    %30 = tpu.matmul %24, %2, %cst_20 {dimension_numbers = #tpu.dot_dimension_numbers<[2], [2], [1], [1], [0, 0, 0, 1, 1, 1], [0], [0]>} : vector<2x8x128xf32>, vector<2x128x128xf32>, vector<2x8x128xf32> -> vector<2x8x128xf32>
    "tpu.trace_stop"() : () -> ()
    %31 = vector.shape_cast %16 : vector<2x8xf32> to vector<2x8x1xf32>
    %32 = vector.broadcast %31 : vector<2x8x1xf32> to vector<2x8x128xf32>
    %33 = arith.addf %30, %32 : vector<2x8x128xf32>
    %c0_21 = arith.constant 0 : index
    %c0_22 = arith.constant 0 : index
    %c0_23 = arith.constant 0 : index
    %34 = vector.load %arg6[%c0_21, %c0_22, %c0_23] : memref<2x8x128xf32, #tpu.memory_space<vmem>>, vector<2x8x128xf32>
    tpu.vector_store %arg6[%c0_21, %c0_22, %c0_23], %33 {strides = array<i32>} : memref<2x8x128xf32, #tpu.memory_space<vmem>>, vector<2x8x128xf32>,
    "tpu.trace_start"() <{level = 10 : i32, message = "bpd,brd->bpr"}> : () -> ()
    %cst_24 = arith.constant dense<0.000000e+00> : vector<2x8x128xf32>
    %35 = tpu.matmul %20, %3, %cst_24 {dimension_numbers = #tpu.dot_dimension_numbers<[2], [2], [1], [1], [0, 0, 0, 1, 1, 1], [0], [0]>} : vector<2x8x128xf32>, vector<2x128x128xf32>, vector<2x8x128xf32> -> vector<2x8x128xf32>
    "tpu.trace_stop"() : () -> ()
    %36 = vector.shape_cast %11 : vector<2x8xf32> to vector<2x8x1xf32>
    %37 = vector.broadcast %36 : vector<2x8x1xf32> to vector<2x8x128xf32>
    %38 = arith.addf %35, %37 : vector<2x8x128xf32>
    %c0_25 = arith.constant 0 : index
    %c0_26 = arith.constant 0 : index
    %c0_27 = arith.constant 0 : index
    %39 = vector.load %arg7[%c0_25, %c0_26, %c0_27] : memref<2x8x128xf32, #tpu.memory_space<vmem>>, vector<2x8x128xf32>
    tpu.vector_store %arg7[%c0_25, %c0_26, %c0_27], %38 {strides = array<i32>} : memref<2x8x128xf32, #tpu.memory_space<vmem>>, vector<2x8x128xf32>,
    return
  }
  func.func @transform_0(%arg0: i32) -> (i32, i32, i32) {
    %c0_i32 = arith.constant 0 : i32
    %c0_i32_0 = arith.constant 0 : i32
    %c0_i32_1 = arith.constant 0 : i32
    return %arg0, %c0_i32, %c0_i32_0 : i32, i32, i32
  }
  func.func @transform_1(%arg0: i32) -> (i32, i32, i32) {
    %c0_i32 = arith.constant 0 : i32
    %c0_i32_0 = arith.constant 0 : i32
    %c0_i32_1 = arith.constant 0 : i32
    return %arg0, %c0_i32, %c0_i32_0 : i32, i32, i32
  }
  func.func @transform_2(%arg0: i32) -> (i32, i32, i32) {
    %c0_i32 = arith.constant 0 : i32
    %c0_i32_0 = arith.constant 0 : i32
    %c0_i32_1 = arith.constant 0 : i32
    return %arg0, %c0_i32, %c0_i32_0 : i32, i32, i32
  }
  func.func @transform_3(%arg0: i32) -> (i32, i32, i32) {
    %c0_i32 = arith.constant 0 : i32
    %c0_i32_0 = arith.constant 0 : i32
    %c0_i32_1 = arith.constant 0 : i32
    return %arg0, %c0_i32, %c0_i32_0 : i32, i32, i32
  }
  func.func @transform_4(%arg0: i32) -> (i32, i32, i32) {
    %c0_i32 = arith.constant 0 : i32
    %c0_i32_0 = arith.constant 0 : i32
    %c0_i32_1 = arith.constant 0 : i32
    return %arg0, %c0_i32, %c0_i32_0 : i32, i32, i32
  }
  func.func @transform_5(%arg0: i32) -> (i32, i32, i32) {
    %c0_i32 = arith.constant 0 : i32
    %c0_i32_0 = arith.constant 0 : i32
    %c0_i32_1 = arith.constant 0 : i32
    return %arg0, %c0_i32, %c0_i32_0 : i32, i32, i32
  }
  func.func @transform_6(%arg0: i32) -> (i32, i32, i32) {
    %c0_i32 = arith.constant 0 : i32
    %c0_i32_0 = arith.constant 0 : i32
    %c0_i32_1 = arith.constant 0 : i32
    return %arg0, %c0_i32, %c0_i32_0 : i32, i32, i32
  }
}

</mosaic_0001>

<bundles_post_ra>
// kernel: tpu_custom_call.1
= control target key start
LH: loop header
LB: loop body
LE: loop exit
PB: predicated region body
PF: predicated region fallthrough
CT: control target
= control target key end

     0   :  { %12 = vsyncpa [#allocation3], 0  ;;  %s1247_s0 = inlined_call_operand.hbm [shape: f32[2,8,128], index: 0, kind: input, shape index: {}]   ;;  %s1248_s1 = inlined_call_operand.hbm [shape: f32[2,8,128], index: 1, kind: input, shape index: {}]   ;;  %s1249_s2 = inlined_call_operand.hbm [shape: f32[2,128,128], index: 2, kind: input, shape index: {}]   ;;  %s1250_s3 = inlined_call_operand.hbm [shape: f32[2,128,128], index: 3, kind: input, shape index: {}]   ;;  %s1251_s4 = inlined_call_operand.hbm [shape: f32[2,1,8], index: 4, kind: output, shape index: {0}]   ;;  %s1252_s5 = inlined_call_operand.hbm [shape: f32[2,8,128], index: 5, kind: output, shape index: {1}]   ;;  %s1253_s6 = inlined_call_operand.hbm [shape: f32[2,8,128], index: 6, kind: output, shape index: {2}]  }
   0x1   :  { %13 = vsyncpa [#allocation6], 0 }
   0x2   :  { %14 = vsyncpa [#allocation9], 0 }
   0x3   :  { %15 = vsyncpa [#allocation4], 0 }
   0x4   :  { %16 = vsyncpa [#allocation12], 0  ;;  %s1005_s21 = smov [#allocation5]   ;;  %s1006_s23 = smov [#allocation2]  }
   0x5   :  { %s34_s22 = sshll.u32 %s1005_s21, 4  ;;  %s22_s24 = sshll.u32 %s1006_s23, 4  ;;  %s35_s22 = int_to_ptr.vmem [resolvable:$true] %s34_s22  ;;  %s1054_s24 = int_to_ptr.vmem [resolvable:$true] %s22_s24 }
   0x6   :  { %s841_s27 = scalar_lea.hbm %s1248_s1, 256 }
   0x7   :  { %p842_p0 = scmp.ne.s32.totalorder %s1248_s1, %s841_s27  ;;  %p845_p1 = scmp.lt.u32.totalorder %s841_s27, %s1248_s1 }
   0x9   :  { %p847_p2 = pnand %p845_p1, %p842_p0 }
   0xb   :  { %850 = shalt.err (!%p847_p2)
}
   0xc   :  { %s851_s8 = scalar_lea.vmem %s35_s22, 256  ;;  %p856_p4 = scmp.lt.s32.totalorder %s35_s22, %s35_s22 }
   0xd   :  { %p852_p3 = scmp.ne.s32.totalorder %s35_s22, %s851_s8  ;;  %p857_p5 = scmp.lt.s32.totalorder %s851_s8, %s851_s8 }
   0xf   :  { %p858_p6 = por %p857_p5, %p856_p4 }
  0x11   :  { %p859_p7 = pnand %p858_p6, %p852_p3 }
  0x13   :  { %862 = shalt.err (!%p859_p7)
}
  0x14   :  { %s1007_s9 = smov 128   ;;  %s1008_s10 = smov 8  }
  0x15   :  { %40 = dma.hbm_to_vmem [thread:$0]  %s1248_s1, 256, %s35_s22, [#allocation6], %s1007_s9, %s1007_s9, %s1008_s10  }
  0x16   :  { %s863_s15 = scalar_lea.hbm %s1247_s0, 256 }
  0x17   :  { %p864_p8 = scmp.ne.s32.totalorder %s1247_s0, %s863_s15  ;;  %p867_p9 = scmp.lt.u32.totalorder %s863_s15, %s1247_s0 }
  0x19   :  { %p869_p10 = pnand %p867_p9, %p864_p8 }
  0x1b   :  { %872 = shalt.err (!%p869_p10)
}
  0x1c   :  { %s873_s20 = scalar_lea.vmem %s1054_s24, 256  ;;  %p878_p12 = scmp.lt.s32.totalorder %s1054_s24, %s1054_s24 }
  0x1d   :  { %p874_p11 = scmp.ne.s32.totalorder %s1054_s24, %s873_s20  ;;  %p879_p13 = scmp.lt.s32.totalorder %s873_s20, %s873_s20 }
  0x1f   :  { %p880_p0 = por %p879_p13, %p878_p12 }
  0x21   :  { %p881_p1 = pnand %p880_p0, %p874_p11 }
  0x23   :  { %884 = shalt.err (!%p881_p1)
}
  0x24   :  { %28 = dma.hbm_to_vmem [thread:$0]  %s1247_s0, 256, %s1054_s24, [#allocation3], %s1007_s9, %s1007_s9, %s1008_s10  }
  0x25   :  { %s1009_s22 = smov [#allocation7]   ;;  %s1010_s25 = smov [#allocation8]  }
  0x26   :  { %s46_s23 = sshll.u32 %s1009_s22, 4  ;;  %s58_s26 = sshll.u32 %s1010_s25, 4  ;;  %s47_s23 = int_to_ptr.vmem [resolvable:$true] %s46_s23  ;;  %s1091_s26 = int_to_ptr.vmem [resolvable:$true] %s58_s26 }
  0x27   :  { %s885_s29 = scalar_lea.hbm %s1249_s2, 4096 }
  0x28   :  { %p886_p2 = scmp.ne.s32.totalorder %s1249_s2, %s885_s29  ;;  %p889_p3 = scmp.lt.u32.totalorder %s885_s29, %s1249_s2 }
  0x2a   :  { %p891_p4 = pnand %p889_p3, %p886_p2 }
  0x2c   :  { %894 = shalt.err (!%p891_p4)
}
  0x2d   :  { %s895_s0 = scalar_lea.vmem %s47_s23, 4096  ;;  %p900_p6 = scmp.lt.s32.totalorder %s47_s23, %s47_s23 }
  0x2e   :  { %p896_p5 = scmp.ne.s32.totalorder %s47_s23, %s895_s0  ;;  %p901_p7 = scmp.lt.s32.totalorder %s895_s0, %s895_s0 }
  0x30   :  { %p902_p8 = por %p901_p7, %p900_p6 }
  0x32   :  { %p903_p9 = pnand %p902_p8, %p896_p5 }
  0x34   :  { %906 = shalt.err (!%p903_p9)
}
  0x35   :  { %52 = dma.hbm_to_vmem [thread:$0]  %s1249_s2, 4096, %s47_s23, [#allocation6], %s1007_s9, %s1007_s9, %s1008_s10  }
  0x36   :  { %s907_s15 = scalar_lea.hbm %s1250_s3, 4096 }
  0x37   :  { %p908_p10 = scmp.ne.s32.totalorder %s1250_s3, %s907_s15  ;;  %p911_p11 = scmp.lt.u32.totalorder %s907_s15, %s1250_s3 }
  0x39   :  { %p913_p12 = pnand %p911_p11, %p908_p10 }
  0x3b   :  { %916 = shalt.err (!%p913_p12)
}
  0x3c   :  { %s917_s20 = scalar_lea.vmem %s1091_s26, 4096  ;;  %p922_p0 = scmp.lt.s32.totalorder %s1091_s26, %s1091_s26 }
  0x3d   :  { %p918_p13 = scmp.ne.s32.totalorder %s1091_s26, %s917_s20  ;;  %p923_p1 = scmp.lt.s32.totalorder %s917_s20, %s917_s20 }
  0x3f   :  { %p924_p2 = por %p923_p1, %p922_p0 }
  0x41   :  { %p925_p3 = pnand %p924_p2, %p918_p13 }
  0x43   :  { %928 = shalt.err (!%p925_p3)
}
  0x44   :  { %64 = dma.hbm_to_vmem [thread:$0]  %s1250_s3, 4096, %s1091_s26, [#allocation9], %s1007_s9, %s1007_s9, %s1008_s10  }
  0x45   :  { %995 = dma.done.wait [#allocation3], 256  }
  0x46   :  { %996 = vsyncadd [#allocation3], 4294967040 }
  0x47   :  { %997 = dma.done.wait [#allocation6], 4352  }
  0x48   :  { %998 = vsyncadd [#allocation6], 4294962944 }
  0x49   :  { %999 = dma.done.wait [#allocation9], 4096  }
  0x4a   :  { %1000 = vsyncadd [#allocation9], 4294963200  ;;  %v1011_v0 = vmov 0.0|0.0   ;;  %vm1012_vm0 = vmmov 0   ;;  %v1013_v1 = vmov 0.0   ;;  %v81_v2 = vld [vmem:[#allocation7] sm:$0xff]  ;;  %v145_v18 = vlaneseq }
  0x4b   :  { %731 = vmatprep.subr.bf16.mxu0 %v1011_v0  ;;  %755 = vmatprep.subr.bf16.mxu1 %v1011_v0  ;;  %v82_v3 = vld [vmem:[#allocation7 + $0x8] sm:$0xff]  ;;  %v97_v4 = vld [vmem:[#allocation7 + $0x80] sm:$0xff]  ;;  %v83_v8 = vld [vmem:[#allocation7 + $0x10] sm:$0xff]  ;;  %vm186_vm2 = vcmask 57344   ;;  %s1014_s3 = smov [#allocation10]  }
  0x4c   :  { %623 = vmatprep.mubr.msk.f32.mxu0 %vm1012_vm0, %v1013_v1  ;;  %658 = vmatprep.mubr.msk.f32.mxu1 %vm1012_vm0, %v1013_v1  ;;  %v732_v5 = vpack.c.bf16 %v82_v3, %v81_v2  ;;  %v98_v6 = vld [vmem:[#allocation7 + $0x88] sm:$0xff]  ;;  %v84_v9 = vld [vmem:[#allocation7 + $0x18] sm:$0xff]  ;;  %v99_v10 = vld [vmem:[#allocation7 + $0x90] sm:$0xff]  ;;  %v1138_v21 = vand.u32 127, %v145_v18  ;;  %v177_v51 = vshrl.u32 %v145_v18, 7  ;;  %s478_s21 = sshll.u32 %s1014_s3, 4  ;;  %s479_s21 = int_to_ptr.vmem [resolvable:$true] %s478_s21 }
  0x4d   :  { %v756_v7 = vpack.c.bf16 %v98_v6, %v97_v4  ;;  %v100_v11 = vld [vmem:[#allocation7 + $0x98] sm:$0xff]  ;;  %v735_v12 = vpack.c.bf16 %v84_v9, %v83_v8  ;;  %v85_v14 = vld [vmem:[#allocation7 + $0x20] sm:$0xff]  ;;  %v86_v15 = vld [vmem:[#allocation7 + $0x28] sm:$0xff]  ;;  %s929_s22 = scalar_lea.vmem %s479_s21, 32  ;;  %p934_p5 = scmp.lt.s32.totalorder %s479_s21, %s479_s21 }
  0x4e   :  { %733 = vmatpush3.bf16.xpose.msra.mxu0 %v732_v5  ;;  %v759_v13 = vpack.c.bf16 %v100_v11, %v99_v10  ;;  %v101_v16 = vld [vmem:[#allocation7 + $0xa0] sm:$0xff]  ;;  %v102_v17 = vld [vmem:[#allocation7 + $0xa8] sm:$0xff]  ;;  %v738_v19 = vpack.c.bf16 %v86_v15, %v85_v14  ;;  %v87_v22 = vld [vmem:[#allocation7 + $0x30] sm:$0xff]  ;;  %vm147_vm1 = vcmp.eq.s32.totalorder %v1138_v21, 0  ;;  %v1170_v53 = vsub.s32 %v1138_v21, %v177_v51  ;;  %p930_p4 = scmp.ne.s32.totalorder %s479_s21, %s929_s22  ;;  %p935_p6 = scmp.lt.s32.totalorder %s929_s22, %s929_s22 }
  0x4f   :  { %757 = vmatpush3.bf16.xpose.msra.mxu1 %v756_v7  ;;  %734 = vmatprep.subr.bf16.mxu0 %v1011_v0  ;;  %v762_v20 = vpack.c.bf16 %v102_v17, %v101_v16  ;;  %v88_v23 = vld [vmem:[#allocation7 + $0x38] sm:$0xff]  ;;  %v103_v24 = vld [vmem:[#allocation7 + $0xb0] sm:$0xff]  ;;  %v77_v26 = vld [vmem:[#allocation2] sm:$0xff] }
  0x50   :  { %758 = vmatprep.subr.bf16.mxu1 %v1011_v0  ;;  %v104_v25 = vld [vmem:[#allocation7 + $0xb8] sm:$0xff]  ;;  %v78_v27 = vld [vmem:[#allocation2 + $0x8] sm:$0xff]  ;;  %v741_v28 = vpack.c.bf16 %v88_v23, %v87_v22  ;;  %v1143_v29 = vld [vmem:[#allocation5] sm:$0xff]  ;;  %v1147_v30 = vsel %vm147_vm1, 1.0, %v77_v26  ;;  %v150_v31 = vsel %vm147_vm1, %v77_v26, 0.0  ;;  %p936_p7 = por %p935_p6, %p934_p5 }
  0x51   :  { %v1153_v32 = vsel %vm147_vm1, 1.0, %v78_v27  ;;  %v765_v33 = vpack.c.bf16 %v104_v25, %v103_v24  ;;  %v166_v34 = vmul.f32 %v1147_v30, %v1143_v29  ;;  %152 = vadd.xlane.f32.xlu0 %v150_v31  ;;  %v80_v35 = vld [vmem:[#allocation5 + $0x8] sm:$0xff]  ;;  %v151_v37 = vsel %vm147_vm1, %v78_v27, 0.0  ;;  %v89_v38 = vld [vmem:[#allocation7 + $0x40] sm:$0xff]  ;;  %v90_v39 = vld [vmem:[#allocation7 + $0x48] sm:$0xff] }
  0x52   :  { %v167_v36 = vmul.f32 %v1153_v32, %v80_v35  ;;  %v105_v40 = vld [vmem:[#allocation7 + $0xc0] sm:$0xff]  ;;  %v106_v41 = vld [vmem:[#allocation7 + $0xc8] sm:$0xff]  ;;  %v156_v42 = vsel %vm147_vm1, %v1143_v29, 0.0  ;;  %v744_v43 = vpack.c.bf16 %v90_v39, %v89_v38  ;;  %v157_v44 = vsel %vm147_vm1, %v80_v35, 0.0  ;;  %v91_v46 = vld [vmem:[#allocation7 + $0x50] sm:$0xff]  ;;  %p937_p8 = pnand %p936_p7, %p930_p4 }
  0x53   :  { %168 = vadd.xlane.f32.xlu1 %v166_v34  ;;  %v768_v45 = vpack.c.bf16 %v106_v41, %v105_v40  ;;  %v92_v47 = vld [vmem:[#allocation7 + $0x58] sm:$0xff]  ;;  %v107_v48 = vld [vmem:[#allocation7 + $0xd0] sm:$0xff]  ;;  %v93_v54 = vld [vmem:[#allocation7 + $0x60] sm:$0xff]  ;;  %v164_v8 = vsel %vm147_vm1, 1.0, %v1143_v29  ;;  %v165_v10 = vsel %vm147_vm1, 1.0, %v80_v35 }
  0x54   :  { %v108_v49 = vld [vmem:[#allocation7 + $0xd8] sm:$0xff]  ;;  %v747_v50 = vpack.c.bf16 %v92_v47, %v91_v46  ;;  %v94_v55 = vld [vmem:[#allocation7 + $0x68] sm:$0xff]  ;;  %v109_v56 = vld [vmem:[#allocation7 + $0xe0] sm:$0xff] }
  0x55   :  { %154 = vadd.xlane.f32.xlu0 %v151_v37  ;;  %v771_v52 = vpack.c.bf16 %v108_v49, %v107_v48  ;;  %v110_v57 = vld [vmem:[#allocation7 + $0xe8] sm:$0xff]  ;;  %v750_v58 = vpack.c.bf16 %v94_v55, %v93_v54  ;;  %v95_v60 = vld [vmem:[#allocation7 + $0x70] sm:$0xff]  ;;  %v96_v61 = vld [vmem:[#allocation7 + $0x78] sm:$0xff] }
  0x56   :  { %736 = vmatpush3.bf16.xpose.msra.mxu0 %v735_v12  ;;  %v774_v59 = vpack.c.bf16 %v110_v57, %v109_v56  ;;  %v111_v62 = vld [vmem:[#allocation7 + $0xf0] sm:$0xff]  ;;  %v112_v63 = vld [vmem:[#allocation7 + $0xf8] sm:$0xff]  ;;  %v753_v2 = vpack.c.bf16 %v96_v61, %v95_v60  ;;  %v113_v4 = vld [vmem:[#allocation8] sm:$0xff] }
  0x57   :  { %760 = vmatpush3.bf16.xpose.msra.mxu1 %v759_v13  ;;  %737 = vmatprep.subr.bf16.mxu0 %v1011_v0  ;;  %v777_v3 = vpack.c.bf16 %v112_v63, %v111_v62  ;;  %v114_v5 = vld [vmem:[#allocation8 + $0x8] sm:$0xff]  ;;  %v129_v6 = vld [vmem:[#allocation8 + $0x80] sm:$0xff]  ;;  %v115_v12 = vld [vmem:[#allocation8 + $0x10] sm:$0xff] }
  0x58   :  { %761 = vmatprep.subr.bf16.mxu1 %v1011_v0  ;;  %170 = vadd.xlane.f32.xlu1 %v167_v36  ;;  %v130_v7 = vld [vmem:[#allocation8 + $0x88] sm:$0xff]  ;;  %v780_v9 = vpack.c.bf16 %v114_v5, %v113_v4  ;;  %v116_v13 = vld [vmem:[#allocation8 + $0x18] sm:$0xff]  ;;  %v131_v14 = vld [vmem:[#allocation8 + $0x90] sm:$0xff] }
  0x59   :  { %158 = vadd.xlane.f32.xlu0 %v156_v42  ;;  %v804_v11 = vpack.c.bf16 %v130_v7, %v129_v6  ;;  %v132_v15 = vld [vmem:[#allocation8 + $0x98] sm:$0xff]  ;;  %v783_v16 = vpack.c.bf16 %v116_v13, %v115_v12  ;;  %v117_v18 = vld [vmem:[#allocation8 + $0x20] sm:$0xff]  ;;  %v134_v21 = vld [vmem:[#allocation8 + $0xa8] sm:$0xff] }
  0x5a   :  { %v807_v17 = vpack.c.bf16 %v132_v15, %v131_v14  ;;  %v119_v24 = vld [vmem:[#allocation8 + $0x30] sm:$0xff]  ;;  %v136_v26 = vld [vmem:[#allocation8 + $0xb8] sm:$0xff]  ;;  %v121_v29 = vld [vmem:[#allocation8 + $0x40] sm:$0xff] }
  0x5b   :  { %v135_v25 = vld [vmem:[#allocation8 + $0xb0] sm:$0xff]  ;;  %v122_v31 = vld [vmem:[#allocation8 + $0x48] sm:$0xff]  ;;  %v124_v38 = vld [vmem:[#allocation8 + $0x58] sm:$0xff] }
  0x5c   :  { %160 = vadd.xlane.f32.xlu1 %v157_v44  ;;  %v138_v34 = vld [vmem:[#allocation8 + $0xc8] sm:$0xff]  ;;  %v792_v35 = vpack.c.bf16 %v122_v31, %v121_v29  ;;  %v123_v37 = vld [vmem:[#allocation8 + $0x50] sm:$0xff]  ;;  %v140_v40 = vld [vmem:[#allocation8 + $0xd8] sm:$0xff] }
  0x5d   :  { %v139_v39 = vld [vmem:[#allocation8 + $0xd0] sm:$0xff]  ;;  %v795_v41 = vpack.c.bf16 %v124_v38, %v123_v37  ;;  %v126_v44 = vld [vmem:[#allocation8 + $0x68] sm:$0xff] }
  0x5e   :  { %739 = vmatpush3.bf16.xpose.msra.mxu0 %v738_v19  ;;  %v118_v19 = vld [vmem:[#allocation8 + $0x28] sm:$0xff]  ;;  %v819_v42 = vpack.c.bf16 %v140_v40, %v139_v39  ;;  %v127_v49 = vld [vmem:[#allocation8 + $0x70] sm:$0xff] }
  0x5f   :  { %763 = vmatpush3.bf16.xpose.msra.mxu1 %v762_v20  ;;  %740 = vmatprep.subr.bf16.mxu0 %v1011_v0  ;;  %v133_v20 = vld [vmem:[#allocation8 + $0xa0] sm:$0xff]  ;;  %v786_v22 = vpack.c.bf16 %v118_v19, %v117_v18  ;;  %v142_v46 = vld [vmem:[#allocation8 + $0xe8] sm:$0xff]  ;;  %v143_v51 = vld [vmem:[#allocation8 + $0xf0] sm:$0xff] }
  0x60   :  { %764 = vmatprep.subr.bf16.mxu1 %v1011_v0  ;;  %v810_v23 = vpack.c.bf16 %v134_v21, %v133_v20 }
  0x66   :  { %742 = vmatpush3.bf16.xpose.msra.mxu0 %v741_v28  ;;  %v813_v28 = vpack.c.bf16 %v136_v26, %v135_v25 }
  0x67   :  { %766 = vmatpush3.bf16.xpose.msra.mxu1 %v765_v33  ;;  %743 = vmatprep.subr.bf16.mxu0 %v1011_v0  ;;  %v137_v33 = vld [vmem:[#allocation8 + $0xc0] sm:$0xff] }
  0x68   :  { %767 = vmatprep.subr.bf16.mxu1 %v1011_v0  ;;  %v816_v36 = vpack.c.bf16 %v138_v34, %v137_v33 }
  0x6e   :  { %745 = vmatpush3.bf16.xpose.msra.mxu0 %v744_v43  ;;  %v125_v43 = vld [vmem:[#allocation8 + $0x60] sm:$0xff] }
  0x6f   :  { %769 = vmatpush3.bf16.xpose.msra.mxu1 %v768_v45  ;;  %746 = vmatprep.subr.bf16.mxu0 %v1011_v0  ;;  %v141_v45 = vld [vmem:[#allocation8 + $0xe0] sm:$0xff]  ;;  %v798_v47 = vpack.c.bf16 %v126_v44, %v125_v43 }
  0x70   :  { %770 = vmatprep.subr.bf16.mxu1 %v1011_v0  ;;  %v822_v48 = vpack.c.bf16 %v142_v46, %v141_v45 }
  0x76   :  { %748 = vmatpush3.bf16.xpose.msra.mxu0 %v747_v50  ;;  %v128_v50 = vld [vmem:[#allocation8 + $0x78] sm:$0xff] }
  0x77   :  { %772 = vmatpush3.bf16.xpose.msra.mxu1 %v771_v52  ;;  %749 = vmatprep.subr.bf16.mxu0 %v1011_v0  ;;  %v144_v52 = vld [vmem:[#allocation8 + $0xf8] sm:$0xff]  ;;  %v801_v54 = vpack.c.bf16 %v128_v50, %v127_v49 }
  0x78   :  { %773 = vmatprep.subr.bf16.mxu1 %v1011_v0  ;;  %v825_v55 = vpack.c.bf16 %v144_v52, %v143_v51 }
  0x7e   :  { %751 = vmatpush3.bf16.xpose.msra.mxu0 %v750_v58 }
  0x7f   :  { %775 = vmatpush3.bf16.xpose.msra.mxu1 %v774_v59  ;;  %752 = vmatprep.subr.bf16.mxu0 %v1011_v0 }
  0x80   :  { %776 = vmatprep.subr.bf16.mxu1 %v1011_v0 }
  0x86   :  { %754 = vmatpush3.bf16.xpose.msra.mxu0 %v753_v2 }
  0x87   :  { %778 = vmatpush3.bf16.xpose.msra.mxu1 %v777_v3  ;;  %779 = vmatprep.subr.bf16.mxu0 %v1011_v0 }
  0x88   :  { %803 = vmatprep.subr.bf16.mxu1 %v1011_v0 }
  0x8d   :  { %624 = vmatmul.mubr.f32.vlgmr.msra.gmra.mrb[0].mxu0 %v164_v8 }
  0x8e   :  { %659 = vmatmul.mubr.f32.vlgmr.msra.gmra.mrb[0].mxu1 %v165_v10  ;;  %781 = vmatpush3.bf16.xpose.msra.mxu0 %v780_v9 }
  0x8f   :  { %805 = vmatpush3.bf16.xpose.msra.mxu1 %v804_v11  ;;  %782 = vmatprep.subr.bf16.mxu0 %v1011_v0 }
  0x90   :  { %806 = vmatprep.subr.bf16.mxu1 %v1011_v0  ;;  %693 = vmatprep.mubr.msk.f32.mxu0 %vm1012_vm0, %v1013_v1 }
  0x91   :  { %728 = vmatprep.mubr.msk.f32.mxu1 %vm1012_vm0, %v1013_v1  ;;  %v120_v1 = vld [vmem:[#allocation8 + $0x38] sm:$0xff] }
  0x92   :  { %v789_v27 = vpack.c.bf16 %v120_v1, %v119_v24 }
  0x96   :  { %784 = vmatpush3.bf16.xpose.msra.mxu0 %v783_v16 }
  0x97   :  { %808 = vmatpush3.bf16.xpose.msra.mxu1 %v807_v17  ;;  %785 = vmatprep.subr.bf16.mxu0 %v1011_v0 }
  0x98   :  { %809 = vmatprep.subr.bf16.mxu1 %v1011_v0 }
  0x9e   :  { %787 = vmatpush3.bf16.xpose.msra.mxu0 %v786_v22 }
  0x9f   :  { %811 = vmatpush3.bf16.xpose.msra.mxu1 %v810_v23  ;;  %788 = vmatprep.subr.bf16.mxu0 %v1011_v0 }
  0xa0   :  { %812 = vmatprep.subr.bf16.mxu1 %v1011_v0 }
  0xa6   :  { %790 = vmatpush3.bf16.xpose.msra.mxu0 %v789_v27 }
  0xa7   :  { %814 = vmatpush3.bf16.xpose.msra.mxu1 %v813_v28  ;;  %791 = vmatprep.subr.bf16.mxu0 %v1011_v0 }
  0xa8   :  { %815 = vmatprep.subr.bf16.mxu1 %v1011_v0 }
  0xae   :  { %793 = vmatpush3.bf16.xpose.msra.mxu0 %v792_v35 }
  0xaf   :  { %817 = vmatpush3.bf16.xpose.msra.mxu1 %v816_v36  ;;  %794 = vmatprep.subr.bf16.mxu0 %v1011_v0 }
  0xb0   :  { %818 = vmatprep.subr.bf16.mxu1 %v1011_v0 }
  0xb6   :  { %796 = vmatpush3.bf16.xpose.msra.mxu0 %v795_v41 }
  0xb7   :  { %820 = vmatpush3.bf16.xpose.msra.mxu1 %v819_v42  ;;  %797 = vmatprep.subr.bf16.mxu0 %v1011_v0 }
  0xb8   :  { %821 = vmatprep.subr.bf16.mxu1 %v1011_v0 }
  0xbe   :  { %799 = vmatpush3.bf16.xpose.msra.mxu0 %v798_v47 }
  0xbf   :  { %823 = vmatpush3.bf16.xpose.msra.mxu1 %v822_v48  ;;  %800 = vmatprep.subr.bf16.mxu0 %v1011_v0 }
  0xc0   :  { %824 = vmatprep.subr.bf16.mxu1 %v1011_v0 }
  0xc6   :  { %802 = vmatpush3.bf16.xpose.msra.mxu0 %v801_v54 }
  0xc7   :  { %826 = vmatpush3.bf16.xpose.msra.mxu1 %v825_v55 }
  0xcd   :  { %694 = vmatmul.mubr.f32.vlgmr.msra.gmra.mrb[2].mxu0 %v1147_v30 }
  0xce   :  { %729 = vmatmul.mubr.f32.vlgmr.msra.gmra.mrb[2].mxu1 %v1153_v32 }
  0xde   :  { %v153_v56 = vpop.xlane.xlu0 %152 }
  0xe0   :  { %v169_v57 = vpop.xlane.xlu1 %168 }
  0xe1   :  { %v172_v58 = vadd.f32 %v169_v57, %v153_v56 }
  0xe2   :  { %v155_v61 = vpop.xlane.xlu0 %154 }
  0xe3   :  { %v179_v59 = vrot.slane %v172_v58, %v1170_v53 }
  0xe5   :  { %v171_v60 = vpop.xlane.xlu1 %170  ;;  %187 = vst.msk [vmem:[#allocation10] sm:$0x1] %vm186_vm2, %v179_v59 }
  0xe6   :  { %v173_v0 = vadd.f32 %v171_v60, %v155_v61 }
  0xe8   :  { %v183_v62 = vrot.slane %v173_v0, %v1170_v53 }
  0xea   :  { %188 = vst.msk [vmem:[#allocation10 + $0x1] sm:$0x1] %vm186_vm2, %v183_v62 }
  0xeb   :  { %940 = shalt.err (!%p937_p8)
}
  0xec   :  { %s941_s26 = scalar_lea.hbm %s1251_s4, 32 }
  0xed   :  { %p942_p9 = scmp.ne.s32.totalorder %s1251_s4, %s941_s26  ;;  %p945_p10 = scmp.lt.u32.totalorder %s941_s26, %s1251_s4 }
  0xef   :  { %p947_p11 = pnand %p945_p10, %p942_p9 }
  0xf1   :  { %950 = shalt.err (!%p947_p11)
}
  0xf2   :  { %s1015_s7 = smov 16   ;;  %s1016_s8 = smov 1   ;;  %v159_v30 = vpop.xlane.xlu0 %158  ;;  %v161_v32 = vpop.xlane.xlu1 %160 }
  0xf3   :  { %484 = dma.vmem_to_hbm [thread:$0]  %s479_s21, 32, %s1251_s4, [#allocation4], %s1015_s7, %s1015_s7, %s1016_s8  }
  0xf4   :  { %s1017_s24 = smov [#allocation11]  }
  0xf5   :  { %s490_s12 = sshll.u32 %s1017_s24, 4  ;;  %s491_s12 = int_to_ptr.vmem [resolvable:$true] %s490_s12 }
  0xf6   :  { %s951_s13 = scalar_lea.vmem %s491_s12, 256  ;;  %p956_p13 = scmp.lt.s32.totalorder %s491_s12, %s491_s12 }
  0xf7   :  { %p952_p12 = scmp.ne.s32.totalorder %s491_s12, %s951_s13  ;;  %p957_p0 = scmp.lt.s32.totalorder %s951_s13, %s951_s13 }
  0xf9   :  { %p958_p1 = por %p957_p0, %p956_p13 }
  0xfb   :  { %p959_p2 = pnand %p958_p1, %p952_p12 }
 0x160   :  { %v255_v53 = vpop.f32.mrb[0].mxu0 }
 0x161   :  { %v325_v63 = vpop.f32.mrb[0].mxu1  ;;  %v625_v2 = vpop.f32.mrb[1].mxu0  ;;  %v256_v3 = vadd.f32 %v255_v53, %v159_v30 }
 0x162   :  { %v660_v4 = vpop.f32.mrb[1].mxu1  ;;  %v326_v5 = vadd.f32 %v325_v63, %v161_v32 }
 0x163   :  { %329 = vst [vmem:[#allocation11] sm:$0xff] %v256_v3 }
 0x164   :  { %330 = vst [vmem:[#allocation11 + $0x8] sm:$0xff] %v326_v5 }
 0x165   :  { %962 = shalt.err (!%p959_p2)
}
 0x166   :  { %s963_s15 = scalar_lea.hbm %s1252_s5, 256 }
 0x167   :  { %p964_p3 = scmp.ne.s32.totalorder %s1252_s5, %s963_s15  ;;  %p967_p4 = scmp.lt.u32.totalorder %s963_s15, %s1252_s5 }
 0x169   :  { %p969_p5 = pnand %p967_p4, %p964_p3 }
 0x16b   :  { %972 = shalt.err (!%p969_p5)
}
 0x16c   :  { %496 = dma.vmem_to_hbm [thread:$0]  %s491_s12, 256, %s1252_s5, [#allocation12], %s1007_s9, %s1007_s9, %s1008_s10  }
 0x16d   :  { %s1018_s1 = smov [#allocation13]  }
 0x16e   :  { %s502_s3 = sshll.u32 %s1018_s1, 4  ;;  %s503_s3 = int_to_ptr.vmem [resolvable:$true] %s502_s3 }
 0x16f   :  { %s973_s21 = scalar_lea.vmem %s503_s3, 256  ;;  %p978_p7 = scmp.lt.s32.totalorder %s503_s3, %s503_s3 }
 0x170   :  { %p974_p6 = scmp.ne.s32.totalorder %s503_s3, %s973_s21  ;;  %p979_p8 = scmp.lt.s32.totalorder %s973_s21, %s973_s21 }
 0x172   :  { %p980_p9 = por %p979_p8, %p978_p7 }
 0x174   :  { %p981_p10 = pnand %p980_p9, %p974_p6 }
 0x1a0   :  { %v397_v6 = vpop.f32.mrb[2].mxu0 }
 0x1a1   :  { %v398_v7 = vadd.f32 %v397_v6, %v153_v56  ;;  %v467_v8 = vpop.f32.mrb[2].mxu1  ;;  %v695_v9 = vpop.f32.mrb[3].mxu0 }
 0x1a2   :  { %v468_v10 = vadd.f32 %v467_v8, %v155_v61  ;;  %v730_v11 = vpop.f32.mrb[3].mxu1 }
 0x1a3   :  { %471 = vst [vmem:[#allocation13] sm:$0xff] %v398_v7 }
 0x1a4   :  { %472 = vst [vmem:[#allocation13 + $0x8] sm:$0xff] %v468_v10 }
 0x1a5   :  { %984 = shalt.err (!%p981_p10)
}
 0x1a6   :  { %s985_s23 = scalar_lea.hbm %s1253_s6, 256 }
 0x1a7   :  { %p986_p11 = scmp.ne.s32.totalorder %s1253_s6, %s985_s23  ;;  %p989_p12 = scmp.lt.u32.totalorder %s985_s23, %s1253_s6 }
 0x1a9   :  { %p991_p13 = pnand %p989_p12, %p986_p11 }
 0x1ab   :  { %994 = shalt.err (!%p991_p13)
}
 0x1ac   :  { %508 = dma.vmem_to_hbm [thread:$0]  %s503_s3, 256, %s1253_s6, [#allocation12], %s1007_s9, %s1007_s9, %s1008_s10  }
 0x1ad   :  { %1001 = dma.done.wait [#allocation4], 32  }
 0x1ae   :  { %1002 = vsyncadd [#allocation4], 4294967264 }
 0x1af   :  { %1003 = dma.done.wait [#allocation12], 512  }
 0x1b0   :  { %1004 = vsyncadd [#allocation12], 4294966784 }
 0x1b1   :  { %518 = vsyncpa [#allocation3], 1 }
 0x1b2   :  { %519 = vsyncpa [#allocation6], 1 }
 0x1b3   :  { %520 = vsyncpa [#allocation9], 1 }
 0x1b4   :  { %521 = vsyncpa [#allocation4], 1 }
 0x1b5   :  { %522 = vsyncpa [#allocation12], 1 }

</bundles_post_ra>
